<compile_context>
chip_gen: v7x
topology: tpu7x:2x2x1
jax: 0.10.0
libtpu: 0.0.40
codegen_flags: <defaults>
</compile_context>

<pallas_src>
import functools

import jax
import jax.numpy as jnp
from jax import lax
from jax.experimental import pallas as pl
from jax.experimental.pallas import tpu as pltpu


def _dense_layer_kernel(x_ref, s1_ref, t1_ref, w1_ref, t2_ref, w2_ref,
                        coord_ref, out_ref, *, height, width, c_in, c_out):
    """One image per grid step; all refs are VMEM blocks.

    x_ref     : (Cin,      HW) f32   input image, channels in sublanes
    s1 / t1   : (Cin,       1) f32   folded BN1 scale / shift
    w1_ref    : (Cmid,    Cin) f32   1x1 conv weight with BN2 scale folded in
    t2_ref    : (Cmid,      1) f32   folded BN2 shift
    w2_ref    : (9*Cout, Cmid) bf16  3x3 conv weights, tap-major row blocks
    coord_ref : (2,        HW) i32   row 0 = h index, row 1 = w index per lane
    out_ref   : (Cin+Cout, HW) f32   identity copy followed by the new channels
    """
    hw = height * width

    # BN1 + ReLU (f32 elementwise; per-channel scale/shift broadcast over lanes).
    y = jnp.maximum(x_ref[...] * s1_ref[...] + t1_ref[...], 0.0)       # (Cin, HW)

    # 1x1 conv as a lane-dense MXU matmul (BN2 scale already in w1); K=Cin is
    # tiny so f32 operands cost nothing and keep accuracy tight.
    z = jnp.dot(w1_ref[...], y, preferred_element_type=jnp.float32)    # (Cmid, HW)
    z = jnp.maximum(z + t2_ref[...], 0.0)                              # BN2 shift + ReLU

    # 3x3 conv with zero padding: one stacked matmul produces all 9 tap
    # contributions indexed by *source* position.
    taps = jnp.dot(w2_ref[...], z.astype(jnp.bfloat16),
                   preferred_element_type=jnp.float32)                 # (9*Cout, HW)

    h_idx = coord_ref[0:1, :]                                          # (1, HW) i32
    w_idx = coord_ref[1:2, :]                                          # (1, HW) i32

    def tap_slab(t):
        oy, ox = t // 3 - 1, t % 3 - 1
        shift = oy * width + ox                                        # static int
        slab = taps[t * c_out:(t + 1) * c_out, :]                      # (Cout, HW)
        if shift != 0:
            # Rotate source-indexed contributions onto output positions.
            slab = pltpu.roll(slab, shift=(-shift) % hw, axis=1)       # XLU lane roll
        # Post-roll validity: zero contributions whose source (h+oy, w+ox)
        # would come from the zero padding (also kills roll wraparound).
        conds = []
        if oy == -1:
            conds.append(h_idx >= 1)
        elif oy == 1:
            conds.append(h_idx <= height - 2)
        if ox == -1:
            conds.append(w_idx >= 1)
        elif ox == 1:
            conds.append(w_idx <= width - 2)
        if conds:
            ok = conds[0]
            for c in conds[1:]:
                ok = ok & c
            slab = slab * ok.astype(jnp.float32)                       # (1,HW) bcast
        return slab

    # Center tap (t=4): shift 0, no mask -> use it to initialize the accumulator.
    acc = tap_slab(4)
    for t in (0, 1, 2, 3, 5, 6, 7, 8):
        acc = acc + tap_slab(t)

    # Identity copy + new channels, written directly into the concat output.
    out_ref[0:c_in, :] = x_ref[...].astype(out_ref.dtype)
    out_ref[c_in:, :] = acc.astype(out_ref.dtype)


def dense_layer_pallas(x, g1, b1, m1, v1, w1_oihw, g2, b2, m2, v2, w2_oihw,
                       eps=1e-5):
    """x: (N, Cin, H, W) f32.  Returns (N, Cin+Cout, H, W) f32."""
    # TODO(synk): dropout path (drop_rate > 0) and training-mode BN batch
    # statistics are not implemented (inference-mode BN, drop_rate == 0).
    N, Cin, H, W = x.shape
    Cmid = w1_oihw.shape[0]
    Cout = w2_oihw.shape[0]
    HW = H * W

    # Fold inference-mode BatchNorms into per-channel scale / shift.
    # (Weight preprocessing below is tiny; if this layer is called repeatedly
    #  with fixed weights it can be hoisted out and passed in pre-folded.)
    s1 = g1 / jnp.sqrt(v1 + eps)
    t1 = b1 - m1 * s1
    s2 = g2 / jnp.sqrt(v2 + eps)
    t2 = b2 - m2 * s2

    # BN2 scale folds linearly into the 1x1 conv weights; keep f32 (K=Cin tiny).
    w1_folded = w1_oihw[:, :, 0, 0] * s2[:, None]                       # (Cmid, Cin)

    # 3x3 weights, tap-major row blocks: rows [t*Cout, (t+1)*Cout) hold tap
    # t = ky*3 + kx as a (Cout, Cmid) matrix.  bf16 operands, f32 MXU acc.
    w2_stacked = (jnp.transpose(w2_oihw, (2, 3, 0, 1))
                  .reshape(9 * Cout, Cmid).astype(jnp.bfloat16))        # (9*Cout, Cmid)

    # Tiny (2, HW) int32 row/col index per output lane; the per-tap edge masks
    # are built in-kernel from it (replaces the old (9*Cout, N*HW) f32 masks).
    hh = jnp.arange(H, dtype=jnp.int32)
    ww = jnp.arange(W, dtype=jnp.int32)
    coords = jnp.stack([jnp.repeat(hh, W), jnp.tile(ww, H)], axis=0)    # (2, HW)

    # Lane-dense per-image layout: pure reshape, no transpose.
    x_flat = x.reshape(N, Cin, HW)

    kernel = functools.partial(_dense_layer_kernel, height=H, width=W,
                               c_in=Cin, c_out=Cout)

    out_flat = pl.pallas_call(
        kernel,
        out_shape=jax.ShapeDtypeStruct((N, Cin + Cout, HW), x.dtype),
        grid=(N,),
        in_specs=[
            pl.BlockSpec((pl.Squeezed(), Cin, HW), lambda n: (n, 0, 0)),  # x
            pl.BlockSpec((Cin, 1), lambda n: (0, 0)),                     # s1
            pl.BlockSpec((Cin, 1), lambda n: (0, 0)),                     # t1
            pl.BlockSpec((Cmid, Cin), lambda n: (0, 0)),                  # w1
            pl.BlockSpec((Cmid, 1), lambda n: (0, 0)),                    # t2
            pl.BlockSpec((9 * Cout, Cmid), lambda n: (0, 0)),             # w2
            pl.BlockSpec((2, HW), lambda n: (0, 0)),                      # coords
        ],
        out_specs=pl.BlockSpec((pl.Squeezed(), Cin + Cout, HW),
                               lambda n: (n, 0, 0)),
        compiler_params=pltpu.CompilerParams(
            dimension_semantics=("parallel",)),
    )(x_flat, s1.reshape(Cin, 1), t1.reshape(Cin, 1), w1_folded,
      t2.reshape(Cmid, 1), w2_stacked, coords)

    return out_flat.reshape(N, Cin + Cout, H, W)


def reference_nchw(x, g1, b1, m1, v1, w1_oihw, g2, b2, m2, v2, w2_oihw, eps=1e-5):
    # Plain-JAX reference mirroring the PyTorch module (inference-mode BN).
    s1 = g1 / jnp.sqrt(v1 + eps)
    y = jnp.maximum(x * s1[None, :, None, None]
                    + (b1 - m1 * s1)[None, :, None, None], 0.0)
    z = lax.conv_general_dilated(y, w1_oihw, (1, 1), 'VALID',
                                 dimension_numbers=('NCHW', 'OIHW', 'NCHW'))
    s2 = g2 / jnp.sqrt(v2 + eps)
    z = jnp.maximum(z * s2[None, :, None, None]
                    + (b2 - m2 * s2)[None, :, None, None], 0.0)
    y2 = lax.conv_general_dilated(z, w2_oihw, (1, 1), ((1, 1), (1, 1)),
                                  dimension_numbers=('NCHW', 'OIHW', 'NCHW'))
    return jnp.concatenate([x, y2], axis=1)


if __name__ == "__main__":
    # Small shapes consistent with the module.
    N, Cin, H, W = 2, 4, 16, 16
    growth_rate, bn_size = 8, 4
    Cmid = bn_size * growth_rate       # 32
    Cout = growth_rate                 # 8
    eps = 1e-5

    key = jax.random.PRNGKey(0)
    ks = jax.random.split(key, 11)
    x = jax.random.normal(ks[0], (N, Cin, H, W), jnp.float32)

    # BN1 params (inference-mode stats), deterministic.
    g1 = jax.random.uniform(ks[1], (Cin,), jnp.float32, 0.5, 1.5)
    b1 = jax.random.normal(ks[2], (Cin,), jnp.float32) * 0.1
    m1 = jax.random.normal(ks[3], (Cin,), jnp.float32) * 0.1
    v1 = jax.random.uniform(ks[4], (Cin,), jnp.float32, 0.5, 1.5)
    # Conv1 weights: (Cmid, Cin, 1, 1)
    w1_oihw = jax.random.normal(ks[5], (Cmid, Cin, 1, 1), jnp.float32) * 0.2
    # BN2 params.
    g2 = jax.random.uniform(ks[6], (Cmid,), jnp.float32, 0.5, 1.5)
    b2 = jax.random.normal(ks[7], (Cmid,), jnp.float32) * 0.1
    m2 = jax.random.normal(ks[8], (Cmid,), jnp.float32) * 0.1
    v2 = jax.random.uniform(ks[9], (Cmid,), jnp.float32, 0.5, 1.5)
    # Conv2 weights: (Cout, Cmid, 3, 3)
    w2_oihw = jax.random.normal(ks[10], (Cout, Cmid, 3, 3), jnp.float32) * 0.1

    dense_layer = jax.jit(dense_layer_pallas)
    out = dense_layer(x, g1, b1, m1, v1, w1_oihw, g2, b2, m2, v2, w2_oihw, eps)
    out = jax.block_until_ready(out)

    ref = reference_nchw(x, g1, b1, m1, v1, w1_oihw, g2, b2, m2, v2, w2_oihw, eps)
    assert out.shape == (N, Cin + Cout, H, W), out.shape
    # The 3x3 conv runs with bf16 MXU operands (f32 accumulation) while the
    # reference conv runs at XLA default precision -> loosened tolerance.
    err = float(jnp.max(jnp.abs(out - ref)))
    assert jnp.allclose(out, ref, atol=5e-2, rtol=5e-2), err
    print("KERNEL_OK")
</pallas_src>

<mosaic_0001>
module attributes {stable_mosaic.version = 11 : i64} {
  func.func @_dense_layer_kernel(%arg0: i32, %arg1: memref<1x4x256xf32, #tpu.memory_space<vmem>>, %arg2: memref<4x1xf32, #tpu.memory_space<vmem>>, %arg3: memref<4x1xf32, #tpu.memory_space<vmem>>, %arg4: memref<32x4xf32, #tpu.memory_space<vmem>>, %arg5: memref<32x1xf32, #tpu.memory_space<vmem>>, %arg6: memref<72x32xbf16, #tpu.memory_space<vmem>>, %arg7: memref<2x256xi32, #tpu.memory_space<vmem>>, %arg8: memref<1x12x256xf32, #tpu.memory_space<vmem>>) attributes {dimension_semantics = [#tpu.dimension_semantics<parallel>], iteration_bounds = array<i64: 2>, scalar_prefetch = 0 : i64, scratch_operands = 0 : i64, tpu.core_type = #tpu.core_type<tc>, window_params = [{transform_indices = @transform_0, window_bounds = array<i64: 1, 4, 256>}, {pipeline_mode = #tpu.pipeline_mode<synchronous>, transform_indices = @transform_1, window_bounds = array<i64: 4, 1>}, {pipeline_mode = #tpu.pipeline_mode<synchronous>, transform_indices = @transform_2, window_bounds = array<i64: 4, 1>}, {pipeline_mode = #tpu.pipeline_mode<synchronous>, transform_indices = @transform_3, window_bounds = array<i64: 32, 4>}, {pipeline_mode = #tpu.pipeline_mode<synchronous>, transform_indices = @transform_4, window_bounds = array<i64: 32, 1>}, {pipeline_mode = #tpu.pipeline_mode<synchronous>, transform_indices = @transform_5, window_bounds = array<i64: 72, 32>}, {pipeline_mode = #tpu.pipeline_mode<synchronous>, transform_indices = @transform_6, window_bounds = array<i64: 2, 256>}, {transform_indices = @transform_7, window_bounds = array<i64: 1, 12, 256>}]} {
    %c0 = arith.constant 0 : index
    %c0_0 = arith.constant 0 : index
    %c0_1 = arith.constant 0 : index
    %0 = vector.load %arg1[%c0, %c0_0, %c0_1] : memref<1x4x256xf32, #tpu.memory_space<vmem>>, vector<1x4x256xf32>
    %1 = vector.shape_cast %0 : vector<1x4x256xf32> to vector<4x256xf32>
    %c0_2 = arith.constant 0 : index
    %c0_3 = arith.constant 0 : index
    %2 = vector.load %arg2[%c0_2, %c0_3] : memref<4x1xf32, #tpu.memory_space<vmem>>, vector<4x1xf32>
    %3 = vector.broadcast %2 : vector<4x1xf32> to vector<4x256xf32>
    %4 = arith.mulf %1, %3 : vector<4x256xf32>
    %c0_4 = arith.constant 0 : index
    %c0_5 = arith.constant 0 : index
    %5 = vector.load %arg3[%c0_4, %c0_5] : memref<4x1xf32, #tpu.memory_space<vmem>>, vector<4x1xf32>
    %6 = vector.broadcast %5 : vector<4x1xf32> to vector<4x256xf32>
    %7 = arith.addf %4, %6 : vector<4x256xf32>
    %cst = arith.constant 0.000000e+00 : f32
    %8 = vector.broadcast %cst : f32 to vector<4x256xf32>
    %9 = arith.maximumf %7, %8 : vector<4x256xf32>
    %c0_6 = arith.constant 0 : index
    %c0_7 = arith.constant 0 : index
    %10 = vector.load %arg4[%c0_6, %c0_7] : memref<32x4xf32, #tpu.memory_space<vmem>>, vector<32x4xf32>
    %cst_8 = arith.constant dense<0.000000e+00> : vector<32x256xf32>
    %11 = tpu.matmul %10, %9, %cst_8 {dimension_numbers = #tpu.dot_dimension_numbers<[1], [0], [0], [1], [0, 0, 1, 1], [], []>} : vector<32x4xf32>, vector<4x256xf32>, vector<32x256xf32> -> vector<32x256xf32>
    %c0_9 = arith.constant 0 : index
    %c0_10 = arith.constant 0 : index
    %12 = vector.load %arg5[%c0_9, %c0_10] : memref<32x1xf32, #tpu.memory_space<vmem>>, vector<32x1xf32>
    %13 = vector.broadcast %12 : vector<32x1xf32> to vector<32x256xf32>
    %14 = arith.addf %11, %13 : vector<32x256xf32>
    %cst_11 = arith.constant 0.000000e+00 : f32
    %15 = vector.broadcast %cst_11 : f32 to vector<32x256xf32>
    %16 = arith.maximumf %14, %15 : vector<32x256xf32>
    %c0_12 = arith.constant 0 : index
    %c0_13 = arith.constant 0 : index
    %17 = vector.load %arg6[%c0_12, %c0_13] : memref<72x32xbf16, #tpu.memory_space<vmem>>, vector<72x32xbf16>
    %18 = arith.truncf %16 : vector<32x256xf32> to vector<32x256xbf16>
    %cst_14 = arith.constant dense<0.000000e+00> : vector<72x256xf32>
    %19 = tpu.matmul %17, %18, %cst_14 {dimension_numbers = #tpu.dot_dimension_numbers<[1], [0], [0], [1], [0, 0, 1, 1], [], []>} : vector<72x32xbf16>, vector<32x256xbf16>, vector<72x256xf32> -> vector<72x256xf32>
    %c0_15 = arith.constant 0 : index
    %c0_16 = arith.constant 0 : index
    %20 = vector.load %arg7[%c0_15, %c0_16] : memref<2x256xi32, #tpu.memory_space<vmem>>, vector<1x256xi32>
    %c1 = arith.constant 1 : index
    %c0_17 = arith.constant 0 : index
    %21 = vector.load %arg7[%c1, %c0_17] : memref<2x256xi32, #tpu.memory_space<vmem>>, vector<1x256xi32>
    %22 = vector.extract_strided_slice %19 {offsets = [32, 0], sizes = [8, 256], strides = [1, 1]} : vector<72x256xf32> to vector<8x256xf32>
    %23 = vector.extract_strided_slice %19 {offsets = [0, 0], sizes = [8, 256], strides = [1, 1]} : vector<72x256xf32> to vector<8x256xf32>
    %c17_i32 = arith.constant 17 : i32
    %24 = tpu.dynamic_rotate %23 by %c17_i32 dim 1 : vector<8x256xf32>, i32 -> vector<8x256xf32>
    %c1_i32 = arith.constant 1 : i32
    %25 = vector.broadcast %c1_i32 : i32 to vector<1x256xi32>
    %26 = arith.cmpi sge, %20, %25 : vector<1x256xi32>
    %c1_i32_18 = arith.constant 1 : i32
    %27 = vector.broadcast %c1_i32_18 : i32 to vector<1x256xi32>
    %28 = arith.cmpi sge, %21, %27 : vector<1x256xi32>
    %29 = arith.andi %26, %28 : vector<1x256xi1>
    %30 = arith.extui %29 : vector<1x256xi1> to vector<1x256xi32>
    %31 = arith.sitofp %30 : vector<1x256xi32> to vector<1x256xf32>
    %32 = vector.broadcast %31 : vector<1x256xf32> to vector<8x256xf32>
    %33 = arith.mulf %24, %32 : vector<8x256xf32>
    %34 = arith.addf %22, %33 : vector<8x256xf32>
    %35 = vector.extract_strided_slice %19 {offsets = [8, 0], sizes = [8, 256], strides = [1, 1]} : vector<72x256xf32> to vector<8x256xf32>
    %c16_i32 = arith.constant 16 : i32
    %36 = tpu.dynamic_rotate %35 by %c16_i32 dim 1 : vector<8x256xf32>, i32 -> vector<8x256xf32>
    %c1_i32_19 = arith.constant 1 : i32
    %37 = vector.broadcast %c1_i32_19 : i32 to vector<1x256xi32>
    %38 = arith.cmpi sge, %20, %37 : vector<1x256xi32>
    %39 = arith.extui %38 : vector<1x256xi1> to vector<1x256xi32>
    %40 = arith.sitofp %39 : vector<1x256xi32> to vector<1x256xf32>
    %41 = vector.broadcast %40 : vector<1x256xf32> to vector<8x256xf32>
    %42 = arith.mulf %36, %41 : vector<8x256xf32>
    %43 = arith.addf %34, %42 : vector<8x256xf32>
    %44 = vector.extract_strided_slice %19 {offsets = [16, 0], sizes = [8, 256], strides = [1, 1]} : vector<72x256xf32> to vector<8x256xf32>
    %c15_i32 = arith.constant 15 : i32
    %45 = tpu.dynamic_rotate %44 by %c15_i32 dim 1 : vector<8x256xf32>, i32 -> vector<8x256xf32>
    %c1_i32_20 = arith.constant 1 : i32
    %46 = vector.broadcast %c1_i32_20 : i32 to vector<1x256xi32>
    %47 = arith.cmpi sge, %20, %46 : vector<1x256xi32>
    %c14_i32 = arith.constant 14 : i32
    %48 = vector.broadcast %c14_i32 : i32 to vector<1x256xi32>
    %49 = arith.cmpi sle, %21, %48 : vector<1x256xi32>
    %50 = arith.andi %47, %49 : vector<1x256xi1>
    %51 = arith.extui %50 : vector<1x256xi1> to vector<1x256xi32>
    %52 = arith.sitofp %51 : vector<1x256xi32> to vector<1x256xf32>
    %53 = vector.broadcast %52 : vector<1x256xf32> to vector<8x256xf32>
    %54 = arith.mulf %45, %53 : vector<8x256xf32>
    %55 = arith.addf %43, %54 : vector<8x256xf32>
    %56 = vector.extract_strided_slice %19 {offsets = [24, 0], sizes = [8, 256], strides = [1, 1]} : vector<72x256xf32> to vector<8x256xf32>
    %c1_i32_21 = arith.constant 1 : i32
    %57 = tpu.dynamic_rotate %56 by %c1_i32_21 dim 1 : vector<8x256xf32>, i32 -> vector<8x256xf32>
    %c1_i32_22 = arith.constant 1 : i32
    %58 = vector.broadcast %c1_i32_22 : i32 to vector<1x256xi32>
    %59 = arith.cmpi sge, %21, %58 : vector<1x256xi32>
    %60 = arith.extui %59 : vector<1x256xi1> to vector<1x256xi32>
    %61 = arith.sitofp %60 : vector<1x256xi32> to vector<1x256xf32>
    %62 = vector.broadcast %61 : vector<1x256xf32> to vector<8x256xf32>
    %63 = arith.mulf %57, %62 : vector<8x256xf32>
    %64 = arith.addf %55, %63 : vector<8x256xf32>
    %65 = vector.extract_strided_slice %19 {offsets = [40, 0], sizes = [8, 256], strides = [1, 1]} : vector<72x256xf32> to vector<8x256xf32>
    %c255_i32 = arith.constant 255 : i32
    %66 = tpu.dynamic_rotate %65 by %c255_i32 dim 1 : vector<8x256xf32>, i32 -> vector<8x256xf32>
    %c14_i32_23 = arith.constant 14 : i32
    %67 = vector.broadcast %c14_i32_23 : i32 to vector<1x256xi32>
    %68 = arith.cmpi sle, %21, %67 : vector<1x256xi32>
    %69 = arith.extui %68 : vector<1x256xi1> to vector<1x256xi32>
    %70 = arith.sitofp %69 : vector<1x256xi32> to vector<1x256xf32>
    %71 = vector.broadcast %70 : vector<1x256xf32> to vector<8x256xf32>
    %72 = arith.mulf %66, %71 : vector<8x256xf32>
    %73 = arith.addf %64, %72 : vector<8x256xf32>
    %74 = vector.extract_strided_slice %19 {offsets = [48, 0], sizes = [8, 256], strides = [1, 1]} : vector<72x256xf32> to vector<8x256xf32>
    %c241_i32 = arith.constant 241 : i32
    %75 = tpu.dynamic_rotate %74 by %c241_i32 dim 1 : vector<8x256xf32>, i32 -> vector<8x256xf32>
    %c14_i32_24 = arith.constant 14 : i32
    %76 = vector.broadcast %c14_i32_24 : i32 to vector<1x256xi32>
    %77 = arith.cmpi sle, %20, %76 : vector<1x256xi32>
    %c1_i32_25 = arith.constant 1 : i32
    %78 = vector.broadcast %c1_i32_25 : i32 to vector<1x256xi32>
    %79 = arith.cmpi sge, %21, %78 : vector<1x256xi32>
    %80 = arith.andi %77, %79 : vector<1x256xi1>
    %81 = arith.extui %80 : vector<1x256xi1> to vector<1x256xi32>
    %82 = arith.sitofp %81 : vector<1x256xi32> to vector<1x256xf32>
    %83 = vector.broadcast %82 : vector<1x256xf32> to vector<8x256xf32>
    %84 = arith.mulf %75, %83 : vector<8x256xf32>
    %85 = arith.addf %73, %84 : vector<8x256xf32>
    %86 = vector.extract_strided_slice %19 {offsets = [56, 0], sizes = [8, 256], strides = [1, 1]} : vector<72x256xf32> to vector<8x256xf32>
    %c240_i32 = arith.constant 240 : i32
    %87 = tpu.dynamic_rotate %86 by %c240_i32 dim 1 : vector<8x256xf32>, i32 -> vector<8x256xf32>
    %c14_i32_26 = arith.constant 14 : i32
    %88 = vector.broadcast %c14_i32_26 : i32 to vector<1x256xi32>
    %89 = arith.cmpi sle, %20, %88 : vector<1x256xi32>
    %90 = arith.extui %89 : vector<1x256xi1> to vector<1x256xi32>
    %91 = arith.sitofp %90 : vector<1x256xi32> to vector<1x256xf32>
    %92 = vector.broadcast %91 : vector<1x256xf32> to vector<8x256xf32>
    %93 = arith.mulf %87, %92 : vector<8x256xf32>
    %94 = arith.addf %85, %93 : vector<8x256xf32>
    %95 = vector.extract_strided_slice %19 {offsets = [64, 0], sizes = [8, 256], strides = [1, 1]} : vector<72x256xf32> to vector<8x256xf32>
    %c239_i32 = arith.constant 239 : i32
    %96 = tpu.dynamic_rotate %95 by %c239_i32 dim 1 : vector<8x256xf32>, i32 -> vector<8x256xf32>
    %c14_i32_27 = arith.constant 14 : i32
    %97 = vector.broadcast %c14_i32_27 : i32 to vector<1x256xi32>
    %98 = arith.cmpi sle, %20, %97 : vector<1x256xi32>
    %c14_i32_28 = arith.constant 14 : i32
    %99 = vector.broadcast %c14_i32_28 : i32 to vector<1x256xi32>
    %100 = arith.cmpi sle, %21, %99 : vector<1x256xi32>
    %101 = arith.andi %98, %100 : vector<1x256xi1>
    %102 = arith.extui %101 : vector<1x256xi1> to vector<1x256xi32>
    %103 = arith.sitofp %102 : vector<1x256xi32> to vector<1x256xf32>
    %104 = vector.broadcast %103 : vector<1x256xf32> to vector<8x256xf32>
    %105 = arith.mulf %96, %104 : vector<8x256xf32>
    %106 = arith.addf %94, %105 : vector<8x256xf32>
    %c0_29 = arith.constant 0 : index
    %c0_30 = arith.constant 0 : index
    %c0_31 = arith.constant 0 : index
    %107 = vector.load %arg1[%c0_29, %c0_30, %c0_31] : memref<1x4x256xf32, #tpu.memory_space<vmem>>, vector<1x4x256xf32>
    %108 = vector.shape_cast %107 : vector<1x4x256xf32> to vector<4x256xf32>
    %c0_32 = arith.constant 0 : index
    %c0_33 = arith.constant 0 : index
    %c0_34 = arith.constant 0 : index
    %109 = vector.load %arg8[%c0_32, %c0_33, %c0_34] : memref<1x12x256xf32, #tpu.memory_space<vmem>>, vector<1x4x256xf32>
    %110 = vector.shape_cast %109 : vector<1x4x256xf32> to vector<4x256xf32>
    %111 = vector.shape_cast %108 : vector<4x256xf32> to vector<1x4x256xf32>
    tpu.vector_store %arg8[%c0_32, %c0_33, %c0_34], %111 {strides = array<i32>} : memref<1x12x256xf32, #tpu.memory_space<vmem>>, vector<1x4x256xf32>,
    %c0_35 = arith.constant 0 : index
    %c4 = arith.constant 4 : index
    %c0_36 = arith.constant 0 : index
    %112 = vector.load %arg8[%c0_35, %c4, %c0_36] : memref<1x12x256xf32, #tpu.memory_space<vmem>>, vector<1x8x256xf32>
    %113 = vector.shape_cast %112 : vector<1x8x256xf32> to vector<8x256xf32>
    %114 = vector.shape_cast %106 : vector<8x256xf32> to vector<1x8x256xf32>
    tpu.vector_store %arg8[%c0_35, %c4, %c0_36], %114 {strides = array<i32>} : memref<1x12x256xf32, #tpu.memory_space<vmem>>, vector<1x8x256xf32>,
    return
  }
  func.func @transform_0(%arg0: i32) -> (i32, i32, i32) {
    %c0_i32 = arith.constant 0 : i32
    %c0_i32_0 = arith.constant 0 : i32
    %c0_i32_1 = arith.constant 0 : i32
    return %arg0, %c0_i32, %c0_i32_0 : i32, i32, i32
  }
  func.func @transform_1(%arg0: i32) -> (i32, i32) {
    %c0_i32 = arith.constant 0 : i32
    %c0_i32_0 = arith.constant 0 : i32
    %c0_i32_1 = arith.constant 0 : i32
    return %c0_i32, %c0_i32_0 : i32, i32
  }
  func.func @transform_2(%arg0: i32) -> (i32, i32) {
    %c0_i32 = arith.constant 0 : i32
    %c0_i32_0 = arith.constant 0 : i32
    %c0_i32_1 = arith.constant 0 : i32
    return %c0_i32, %c0_i32_0 : i32, i32
  }
  func.func @transform_3(%arg0: i32) -> (i32, i32) {
    %c0_i32 = arith.constant 0 : i32
    %c0_i32_0 = arith.constant 0 : i32
    %c0_i32_1 = arith.constant 0 : i32
    return %c0_i32, %c0_i32_0 : i32, i32
  }
  func.func @transform_4(%arg0: i32) -> (i32, i32) {
    %c0_i32 = arith.constant 0 : i32
    %c0_i32_0 = arith.constant 0 : i32
    %c0_i32_1 = arith.constant 0 : i32
    return %c0_i32, %c0_i32_0 : i32, i32
  }
  func.func @transform_5(%arg0: i32) -> (i32, i32) {
    %c0_i32 = arith.constant 0 : i32
    %c0_i32_0 = arith.constant 0 : i32
    %c0_i32_1 = arith.constant 0 : i32
    return %c0_i32, %c0_i32_0 : i32, i32
  }
  func.func @transform_6(%arg0: i32) -> (i32, i32) {
    %c0_i32 = arith.constant 0 : i32
    %c0_i32_0 = arith.constant 0 : i32
    %c0_i32_1 = arith.constant 0 : i32
    return %c0_i32, %c0_i32_0 : i32, i32
  }
  func.func @transform_7(%arg0: i32) -> (i32, i32, i32) {
    %c0_i32 = arith.constant 0 : i32
    %c0_i32_0 = arith.constant 0 : i32
    %c0_i32_1 = arith.constant 0 : i32
    return %arg0, %c0_i32, %c0_i32_0 : i32, i32, i32
  }
}

</mosaic_0001>

<bundles_post_ra>
// kernel: tile.9
= control target key start
LH: loop header
LB: loop body
LE: loop exit
PB: predicated region body
PF: predicated region fallthrough
CT: control target
= control target key end

     0   :  { %s7_s6 = smov 3  ;;  %s21_s9 = smov 3  ;;  %vm4_vm0 = vcmask 130048   ;;  %vm11_vm1 = vcmask 1048448   ;;  %vm18_vm2 = vcmask 917248   ;;  %vm25_vm3 = vcmask 786048   ;;  %s128_s0 = inlined_call_operand.vmem [shape: s32[16,16], index: 0, kind: input, shape index: {}]   ;;  %s129_s1 = inlined_call_operand.vmem [shape: s32[1,256], index: 1, kind: output, shape index: {}]  }
   0x1   :  { %v66_v0 = vld [vmem:[%s128_s0 + $0x7] ss:$8 sm:%s7_s6]   ;;  %s81_s10 = smov 112   ;;  %v68_v1 = vld [vmem:[%s128_s0 + $0x5] ss:$8 sm:%s21_s9]   ;;  %s14_s13 = smov 3 }
   0x2   :  { %9 = vrot.lane.b32.xlu0 %v66_v0, %s81_s10  ;;  %s82_s14 = smov 80   ;;  %v67_v2 = vld [vmem:[%s128_s0 + $0x6] ss:$8 sm:%s14_s13]   ;;  %s28_s17 = smov 3  ;;  %vm32_vm4 = vcmask 654848   ;;  %vm39_vm5 = vcmask 523648  }
   0x3   :  { %23 = vrot.lane.b32.xlu1 %v68_v1, %s82_s14  ;;  %v69_v3 = vld [vmem:[%s128_s0 + $0x4] ss:$8 sm:%s28_s17]   ;;  %s35_s20 = smov 3  ;;  %s42_s21 = smov 3  ;;  %vm46_vm6 = vcmask 392448   ;;  %vm53_vm7 = vcmask 261248  }
   0x4   :  { %s83_s22 = smov 96   ;;  %s84_s23 = smov 64   ;;  %v70_v4 = vld [vmem:[%s128_s0 + $0x3] ss:$8 sm:%s35_s20]   ;;  %v71_v5 = vld [vmem:[%s128_s0 + $0x2] ss:$8 sm:%s42_s21]  }
   0x5   :  { %s2_s26 = smov 3  ;;  %s49_s29 = smov 3 }
   0x6   :  { %16 = vrot.lane.b32.xlu0 %v67_v2, %s83_s22  ;;  %v3_v6 = vld [vmem:[%s128_s0] ss:$8 sm:%s2_s26]   ;;  %s85_s3 = smov 48   ;;  %s86_s4 = smov 32  }
   0x7   :  { %30 = vrot.lane.b32.xlu1 %v69_v3, %s84_s23  ;;  %5 = vst.msk [vmem:[#allocation0] ss:$8 sm:$0x3] %vm4_vm0, %v3_v6   ;;  %v72_v7 = vld [vmem:[%s128_s0 + $0x1] ss:$8 sm:%s49_s29]   ;;  %s87_s0 = smov 16  }
   0xa   :  { %37 = vrot.lane.b32.xlu0 %v70_v4, %s85_s3 }
   0xb   :  { %44 = vrot.lane.b32.xlu1 %v71_v5, %s86_s4 }
   0xe   :  { %51 = vrot.lane.b32.xlu0 %v72_v7, %s87_s0 }
  0x74   :  { %v10_v8 = vpop.permute.xlu0 %9  }
  0x75   :  { %12 = vst.msk [vmem:[#allocation0] ss:$8 sm:$0x3] %vm11_vm1, %v10_v8   ;;  %v24_v9 = vpop.permute.xlu1 %23  }
  0x78   :  { %v17_v10 = vpop.permute.xlu0 %16  }
  0x79   :  { %19 = vst.msk [vmem:[#allocation0] ss:$8 sm:$0x3] %vm18_vm2, %v17_v10   ;;  %v31_v11 = vpop.permute.xlu1 %30  }
  0x7a   :  { %26 = vst.msk [vmem:[#allocation0] ss:$8 sm:$0x3] %vm25_vm3, %v24_v9  }
  0x7b   :  { %33 = vst.msk [vmem:[#allocation0] ss:$8 sm:$0x3] %vm32_vm4, %v31_v11  }
  0x7c   :  { %v38_v12 = vpop.permute.xlu0 %37  }
  0x7d   :  { %40 = vst.msk [vmem:[#allocation0] ss:$8 sm:$0x3] %vm39_vm5, %v38_v12   ;;  %v45_v13 = vpop.permute.xlu1 %44  }
  0x7e   :  { %47 = vst.msk [vmem:[#allocation0] ss:$8 sm:$0x3] %vm46_vm6, %v45_v13  }
  0x80   :  { %v52_v14 = vpop.permute.xlu0 %51  }
  0x81   :  { %54 = vst.msk [vmem:[#allocation0] ss:$8 sm:$0x3] %vm53_vm7, %v52_v14  }
  0x88   :  { %v58_v15 = vld [vmem:[#allocation0] sm:$0x1]  ;;  %v62_v16 = vld [vmem:[#allocation0 + $0x8] sm:$0x1] }
  0x89   :  { %60 = vst [vmem:[%s129_s1] sm:$0x1] %v58_v15  ;;  %73 = vst [vmem:[%s129_s1 + $0x1] sm:$0x1] %v62_v16 }

// kernel: dense_layer_pallas.1
= control target key start
LH: loop header
LB: loop body
LE: loop exit
PB: predicated region body
PF: predicated region fallthrough
CT: control target
= control target key end

     0   :  { %s991_s24 = smov 0   ;;  %s1161_s0 = inlined_call_operand.vmem [shape: f32[2,4,256], index: 0, kind: input, shape index: {}]   ;;  %s1162_s1 = inlined_call_operand.vmem [shape: f32[4,1], index: 1, kind: input, shape index: {}]   ;;  %s1163_s2 = inlined_call_operand.vmem [shape: f32[4,1], index: 2, kind: input, shape index: {}]   ;;  %s1164_s3 = inlined_call_operand.vmem [shape: f32[32,4], index: 3, kind: input, shape index: {}]   ;;  %s1165_s4 = inlined_call_operand.vmem [shape: f32[32,1], index: 4, kind: input, shape index: {}]   ;;  %s1166_s5 = inlined_call_operand.vmem [shape: bf16[72,32], index: 5, kind: input, shape index: {}]   ;;  %s1167_s6 = inlined_call_operand.vmem [shape: s32[2,256], index: 6, kind: input, shape index: {}]   ;;  %s1168_s7 = inlined_call_operand.vmem [shape: f32[2,12,256], index: 7, kind: output, shape index: {}]  }
   0x1 LB: > { %s863_s25 = sadd.s32 4294967295, %s938_s24   ;;  %p867_p0 = scmp.ge.s32.totalorder %s938_s24, 1  ;;  %s938_s24 = sphi %s991_s24, %s17_s24  }
   0x2   : > { %p237_p1 = scmp.lt.s32.totalorder %s938_s24, 3 }
   0x4   : > { %p238_p2 = pnand %p867_p0, %p237_p1 }
   0x5   : > { %v281_v0 = vld [vmem:[%s1162_s1] sm:$0xf] (!%p238_p2)  ;;  %v940_v1 = vmov (!%p238_p2), 0   ;;  %p269_p3 = scmp.lt.s32.totalorder (!%p238_p2), %s863_s25, 1  ;;  %v316_v3 = vld [vmem:[%s1165_s4 + $0x10] sm:$0xff] (!%p238_p2)  ;;  %v941_v6 = vmov (!%p238_p2), 0.0   ;;  %v289_v12 = vlaneseq (!%p238_p2) }
   0x6   : > { %241 = sbr.rel (%p238_p2) target bundleno = 748 (0x2ec), region = 48  ;;  %924 = vset.pattern.permute.xlu0 (!%p238_p2), %v940_v1  ;;  %925 = vset.pattern.permute.xlu1 (!%p238_p2), %v940_v1  ;;  %v295_v2 = vld [vmem:[%s1163_s2] sm:$0xf] (!%p238_p2)  ;;  %v315_v8 = vld [vmem:[%s1165_s4 + $0x8] sm:$0xff] (!%p238_p2)  ;;  %v317_v9 = vld [vmem:[%s1165_s4 + $0x18] sm:$0xff] (!%p238_p2)  ;;  %vm353_vm0 = vcmask (!%p238_p2), 1043456  }
   0x7   : > { %284 = vperm.xlu0 (!%p238_p2), %924, %v281_v0   ;;  %549 = vmatprep.mubr.bf16.mxu1 (!%p238_p2), %v940_v1  ;;  %v314_v7 = vld [vmem:[%s1165_s4] sm:$0xff] (!%p238_p2)  ;;  %v942_v10 = vmov (!%p238_p2), 839922192   ;;  %v1032_v14 = vshrl.u32 (!%p238_p2), %v289_v12, 7  ;;  %vm340_vm1 = vcmask (!%p238_p2), 31744   ;;  %v311_v25 = vld [vmem:[%s1164_s3 + $0x8] sm:$0xff] (!%p238_p2) }
   0x8   : > { %422 = vmatprep.mubr.f32.mxu0 (!%p238_p2), %v941_v6  ;;  %320 = vperm.xlu1 (!%p238_p2), %925, %v314_v7   ;;  %v287_v11 = vunpack.c.l.s4 (!%p238_p2), %v942_v10  ;;  %v310_v24 = vld [vmem:[%s1164_s3] sm:$0xff] (!%p238_p2)  ;;  %v312_v26 = vld [vmem:[%s1164_s3 + $0x10] sm:$0xff] (!%p238_p2)  ;;  %v313_v27 = vld [vmem:[%s1164_s3 + $0x18] sm:$0xff] (!%p238_p2)  ;;  %vm491_vm2 = vcmask (!%p238_p2), 261120   ;;  %s943_s20 = smov (!%p238_p2), 17   ;;  %s944_s21 = smov (!%p238_p2), 15  }
   0x9   : > { %v927_v60 = vld [vmem:[%s1166_s5] sm:$0xff] (!%p238_p2)   ;;  %v928_v61 = vld [vmem:[%s1166_s5 + $0x8] sm:$0xff] (!%p238_p2)   ;;  %v929_v62 = vld [vmem:[%s1166_s5 + $0x10] sm:$0xff] (!%p238_p2)   ;;  %s945_s22 = smov (!%p238_p2), 16   ;;  %s946_s23 = smov (!%p238_p2), 1  }
   0xa   : > { %v288_v13 = vunpack.c.0.s8 (!%p238_p2), %v287_v11  ;;  %v930_v63 = vld [vmem:[%s1166_s5 + $0x18] sm:$0xff] (!%p238_p2)   ;;  %v931_v0 = vld [vmem:[%s1166_s5 + $0x20] ss:$0 sps:$4 sm:$0xff] (!%p238_p2)   ;;  %s948_s26 = smov (!%p238_p2), 113   ;;  %s949_s27 = smov (!%p238_p2), 112  }
   0xb   : > { %298 = vperm.xlu0 (!%p238_p2), %924, %v295_v2   ;;  %s950_s28 = smov (!%p238_p2), 111  }
   0xc   : > { %325 = vperm.xlu1 (!%p238_p2), %925, %v315_v8   ;;  %v291_v15 = vsub.s32 (!%p238_p2), %v288_v13, %v1032_v14 }
   0xd   : > { %s1170_s25 = smov (!%p269_p3, %s863_s25), 1 }
   0xe   : > { %s899_s30 = sshll.u32 %s1170_s25, 3  ;;  %s900_s8 = sshll.u32 %s1170_s25, 5 }
   0xf   : > { %s273_s11 = scalar_lea.vmem %s1161_s0, %s899_s30  ;;  %s1014_s14 = scalar_lea.vmem %s1168_s7, %s900_s8  ;;  %330 = vperm.xlu0 %924, %v316_v3  }
  0x10   : > { %v280_v4 = vld [vmem:[%s273_s11] sm:$0xff]  ;;  %335 = vperm.xlu1 %925, %v317_v9   ;;  %s947_s25 = smov 127  }
  0x11   : > { %v794_v5 = vcombine.high %v280_v4, %v280_v4  ;;  %796 = vst [vmem:[%s1014_s14] sm:$0xf] %v280_v4 }
  0x13   : > { %797 = vst [vmem:[%s1014_s14 + $0x8] sm:$0xf] %v794_v5 }
  0x86   : > { %v285_v16 = vpop.permute.xlu0 %284 }
  0x87   : > { %v292_v17 = vrot.slane %v285_v16, %v291_v15  ;;  %v321_v28 = vpop.permute.xlu1 %320 }
  0x89   : > { %v294_v19 = vmul.f32 %v292_v17, %v280_v4 }
  0x8a   : > { %v299_v18 = vpop.permute.xlu0 %298 }
  0x8b   : > { %v306_v20 = vrot.slane %v299_v18, %v291_v15  ;;  %v326_v32 = vpop.permute.xlu1 %325 }
  0x8d   : > { %v308_v21 = vadd.f32 %v306_v20, %v294_v19 }
  0x8e   : > { %v331_v45 = vpop.permute.xlu0 %330 }
  0x8f   : > { %v309_v22 = vmax.f32 %v308_v21, 0.0  ;;  %v336_v48 = vpop.permute.xlu1 %335 }
  0x91   : > { %v339_v23 = vcombine.high %v309_v22, %v309_v22 }
  0x93   : > { %872 = vmatprep.subr.msk.mxu0 %vm353_vm0, %v339_v23 }
  0x94   : > { %873 = vmatpush1.msk.msra.mxu0 %vm353_vm0, %v309_v22 }
  0x95   : > { %874 = vmatmul.mubr.msk.f32.vlgmr.msra.gmra.mrb[0].mxu0 %vm340_vm1, %v310_v24  ;;  %v1072_v24 = vld [vmem:[%s1167_s6] ss:$2 sm:$0x3] }
  0x96   : > { %428 = vmatprep.mubr.f32.mxu0 %v941_v6  ;;  %vm600_vm3 = vcmp.ge.s32.totalorder %v1072_v24, 1  ;;  %vm725_vm12 = vcmp.le.s32.totalorder %v1072_v24, 14 }
  0x99   : > { %875 = vmatmul.mubr.msk.f32.gmra.mrb[2].mxu0 %vm340_vm1, %v311_v25  ;;  %v1077_v25 = vld [vmem:[%s1167_s6 + $0x1] ss:$2 sm:$0x3] }
  0x9a   : > { %434 = vmatprep.mubr.f32.mxu0 %v941_v6  ;;  %vm601_vm4 = vcmp.ge.s32.totalorder %v1077_v25, 1  ;;  %vm651_vm6 = vcmp.le.s32.totalorder %v1077_v25, 14 }
  0x9b   : > { %vm602_vm5 = vmand %vm600_vm3, %vm601_vm4 }
  0x9c   : > { %vm652_vm7 = vmand %vm600_vm3, %vm651_vm6 }
  0x9d   : > { %876 = vmatmul.mubr.msk.f32.gmra.mrb[4].mxu0 %vm340_vm1, %v312_v26  ;;  %v1087_v26 = vand.u32 127, %v289_v12  ;;  %vm726_vm14 = vmand %vm725_vm12, %vm601_vm4 }
  0x9e   : > { %440 = vmatprep.mubr.f32.mxu0 %v941_v6  ;;  %vm775_vm0 = vmand %vm725_vm12, %vm651_vm6 }
  0x9f   : > { %vm597_vm8 = vcmp.lt.s32.totalorder %v1087_v26, 17  ;;  %vm648_vm9 = vcmp.lt.s32.totalorder %v1087_v26, 15  ;;  %vm624_vm10 = vcmp.lt.s32.totalorder %v1087_v26, 16  ;;  %vm674_vm11 = vcmp.lt.s32.totalorder %v1087_v26, 1 }
  0xa0   : > { %vm698_vm13 = vcmp.lt.s32.totalorder %v1087_v26, 127  ;;  %vm722_vm15 = vcmp.lt.s32.totalorder %v1087_v26, 113 }
  0xa1   : > { %877 = vmatmul.mubr.msk.f32.gmra.mrb[6].mxu0 %vm340_vm1, %v313_v27  ;;  %v1090_v27 = vsub.s32 0, %v1032_v14  ;;  %vm748_vm1 = vcmp.lt.s32.totalorder %v1087_v26, 112 }
  0xa2   : > { %539 = vmatprep.mubr.bf16.mxu0 %v940_v1 }
 0x168   : > { %v424_v29 = vpop.f32.mrb[0].mxu0 }
 0x169   : > { %v426_v30 = vpop.f32.mrb[1].mxu0  ;;  %v425_v31 = vadd.f32 %v424_v29, %v321_v28  ;;  %v889_v29 = vsel %vm602_vm5, 1.0, %v941_v6 }
 0x16a   : > { %v427_v33 = vadd.f32 %v426_v30, %v321_v28  ;;  %v1093_v28 = vsub.s32 1, %v1032_v14  ;;  %v609_v30 = vrot.slane %v889_v29, %v1090_v27 }
 0x16b   : > { %v447_v38 = vmax.f32 %v425_v31, 0.0  ;;  %v891_v31 = vsel %vm652_vm7, 1.0, %v941_v6 }
 0x16c   : > { %v430_v34 = vpop.f32.mrb[2].mxu0  ;;  %v448_v40 = vmax.f32 %v427_v33, 0.0  ;;  %v613_v12 = vrot.slane %v889_v29, %v1093_v28 }
 0x16d   : > { %v431_v35 = vadd.f32 %v430_v34, %v326_v32  ;;  %v432_v36 = vpop.f32.mrb[3].mxu0 }
 0x16e   : > { %v433_v37 = vadd.f32 %v432_v36, %v326_v32 }
 0x16f   : > { %v449_v39 = vmax.f32 %v431_v35, 0.0  ;;  %v659_v35 = vrot.slane %v891_v31, %v1090_v27 }
 0x170   : > { %v450_v41 = vmax.f32 %v433_v37, 0.0  ;;  %v436_v42 = vpop.f32.mrb[4].mxu0 }
 0x171   : > { %v464_v43 = vpack.c.bf16 %v449_v39, %v447_v38  ;;  %v438_v44 = vpop.f32.mrb[5].mxu0  ;;  %v437_v47 = vadd.f32 %v436_v42, %v331_v45  ;;  %v663_v38 = vrot.slane %v891_v31, %v1093_v28  ;;  %v890_v39 = vsel %vm600_vm3, 1.0, %v941_v6 }
 0x172   : > { %v465_v46 = vpack.c.bf16 %v450_v41, %v448_v40  ;;  %v439_v49 = vadd.f32 %v438_v44, %v331_v45 }
 0x173   : > { %v451_v54 = vmax.f32 %v437_v47, 0.0 }
 0x174   : > { %v442_v50 = vpop.f32.mrb[6].mxu0  ;;  %507 = vmatprep.subr.bf16.mxu0 %v465_v46  ;;  %901 = vmatprep.subr.bf16.mxu1 %v465_v46  ;;  %v452_v56 = vmax.f32 %v439_v49, 0.0  ;;  %v633_v46 = vrot.slane %v890_v39, %v1090_v27  ;;  %v637_v49 = vrot.slane %v890_v39, %v1093_v28 }
 0x175   : > { %v443_v51 = vadd.f32 %v442_v50, %v336_v48  ;;  %v444_v52 = vpop.f32.mrb[7].mxu0  ;;  %508 = vmatpush1.bf16.msra.mxu0 %v464_v43  ;;  %903 = vmatpush1.bf16.msra.mxu1 %v464_v43  ;;  %v892_v50 = vsel %vm601_vm4, 1.0, %v941_v6 }
 0x176   : > { %v445_v53 = vadd.f32 %v444_v52, %v336_v48 }
 0x177   : > { %v453_v55 = vmax.f32 %v443_v51, 0.0 }
 0x178   : > { %v454_v57 = vmax.f32 %v445_v53, 0.0 }
 0x179   : > { %v466_v58 = vpack.c.bf16 %v453_v55, %v451_v54  ;;  %v683_v55 = vrot.slane %v892_v50, %v1090_v27 }
 0x17a   : > { %v467_v59 = vpack.c.bf16 %v454_v57, %v452_v56 }
 0x17c   : > { %509 = vmatprep.subr.bf16.mxu0 %v467_v59  ;;  %902 = vmatprep.subr.bf16.mxu1 %v467_v59  ;;  %v893_v59 = vsel %vm651_vm6, 1.0, %v941_v6 }
 0x17d   : > { %510 = vmatpush1.bf16.msra.mxu0 %v466_v58  ;;  %904 = vmatpush1.bf16.msra.mxu1 %v466_v58  ;;  %v687_v58 = vrot.slane %v892_v50, %v1093_v28 }
 0x180   : > { %883 = vmatmul.mubr.msk.bf16.vlgmr.msra.gmra.mrb[8].mxu0 %vm491_vm2, %v927_v60  ;;  %884 = vmatmul.mubr.msk.bf16.vlgmr.msra.gmra.mrb[0].mxu1 %vm491_vm2, %v928_v61 }
 0x181   : > { %559 = vmatprep.mubr.bf16.mxu1 %v940_v1 }
 0x188   : > { %885 = vmatmul.mubr.msk.bf16.gmra.mrb[4].mxu1 %vm491_vm2, %v929_v62 }
 0x189   : > { %569 = vmatprep.mubr.bf16.mxu1 %v940_v1 }
 0x190   : > { %886 = vmatmul.mubr.msk.bf16.gmra.mrb[8].mxu1 %vm491_vm2, %v930_v63 }
 0x191   : > { %579 = vmatprep.mubr.bf16.mxu1 %v940_v1 }
 0x198   : > { %887 = vmatmul.mubr.msk.bf16.gmra.mrb[12].mxu1 %vm491_vm2, %v931_v0  ;;  %vm772_vm2 = vcmp.lt.s32.totalorder %v1087_v26, 111 }
 0x253   : > { %v541_v2 = vpop.f32.mrb[8].mxu0  ;;  %v551_v3 = vpop.f32.mrb[0].mxu1 }
 0x254   : > { %591 = vrot.lane.b32.xlu0 %v541_v2, %s943_s20  ;;  %v543_v4 = vpop.f32.mrb[9].mxu0  ;;  %v553_v5 = vpop.f32.mrb[1].mxu1 }
 0x255   : > { %593 = vrot.lane.b32.xlu1 %v543_v4, %s943_s20  ;;  %v545_v7 = vpop.f32.mrb[10].mxu0  ;;  %v555_v8 = vpop.f32.mrb[2].mxu1  ;;  %v711_v4 = vrot.slane %v893_v59, %v1093_v28 }
 0x256   : > { %v547_v9 = vpop.f32.mrb[11].mxu0  ;;  %v557_v10 = vpop.f32.mrb[3].mxu1 }
 0x258   : > { %644 = vrot.lane.b32.xlu0 %v551_v3, %s944_s21  ;;  %v707_v3 = vrot.slane %v893_v59, %v1090_v27 }
 0x259   : > { %646 = vrot.lane.b32.xlu1 %v553_v5, %s944_s21 }
 0x25b   : > { %v561_v1 = vpop.f32.mrb[4].mxu1 }
 0x25c   : > { %620 = vrot.lane.b32.xlu0 %v545_v7, %s945_s22  ;;  %v563_v11 = vpop.f32.mrb[5].mxu1 }
 0x25d   : > { %622 = vrot.lane.b32.xlu1 %v547_v9, %s945_s22  ;;  %v565_v13 = vpop.f32.mrb[6].mxu1 }
 0x25e   : > { %v567_v15 = vpop.f32.mrb[7].mxu1 }
 0x260   : > { %670 = vrot.lane.b32.xlu0 %v555_v8, %s946_s23 }
 0x261   : > { %672 = vrot.lane.b32.xlu1 %v557_v10, %s946_s23 }
 0x263   : > { %v571_v16 = vpop.f32.mrb[8].mxu1 }
 0x264   : > { %694 = vrot.lane.b32.xlu0 %v565_v13, %s947_s25  ;;  %v573_v17 = vpop.f32.mrb[9].mxu1 }
 0x265   : > { %696 = vrot.lane.b32.xlu1 %v567_v15, %s947_s25  ;;  %v575_v18 = vpop.f32.mrb[10].mxu1 }
 0x266   : > { %v577_v19 = vpop.f32.mrb[11].mxu1 }
 0x268   : > { %718 = vrot.lane.b32.xlu0 %v571_v16, %s948_s26 }
 0x269   : > { %720 = vrot.lane.b32.xlu1 %v573_v17, %s948_s26 }
 0x26b   : > { %v581_v20 = vpop.f32.mrb[12].mxu1 }
 0x26c   : > { %744 = vrot.lane.b32.xlu0 %v575_v18, %s949_s27  ;;  %v583_v21 = vpop.f32.mrb[13].mxu1 }
 0x26d   : > { %746 = vrot.lane.b32.xlu1 %v577_v19, %s949_s27  ;;  %v585_v22 = vpop.f32.mrb[14].mxu1 }
 0x26e   : > { %v586_v23 = vpop.f32.mrb[15].mxu1 }
 0x26f   : > { %v895_v23 = vsel %vm725_vm12, 1.0, %v941_v6 }
 0x270   : > { %768 = vrot.lane.b32.xlu0 %v581_v20, %s950_s28 }
 0x271   : > { %770 = vrot.lane.b32.xlu1 %v583_v21, %s950_s28 }
 0x2c6   : > { %v592_v32 = vpop.permute.xlu0 %591 }
 0x2c7   : > { %v594_v33 = vpop.permute.xlu1 %593 }
 0x2c8   : > { %v598_v34 = vsel %vm597_vm8, %v592_v32, %v594_v33  ;;  %v599_v14 = vsel %vm597_vm8, %v594_v33, %v592_v32 }
 0x2c9   : > { %v616_v36 = vmul.f32 %v609_v30, %v599_v14  ;;  %v617_v37 = vmul.f32 %v613_v12, %v598_v34  ;;  %v757_v14 = vrot.slane %v895_v23, %v1090_v27 }
 0x2ca   : > { %v645_v40 = vpop.permute.xlu0 %644 }
 0x2cb   : > { %v618_v41 = vadd.f32 %v616_v36, %v561_v1  ;;  %v619_v42 = vadd.f32 %v617_v37, %v563_v11  ;;  %v647_v43 = vpop.permute.xlu1 %646  ;;  %v894_v1 = vsel %vm726_vm14, 1.0, %v941_v6  ;;  %v896_v37 = vsel %vm775_vm0, 1.0, %v941_v6 }
 0x2cc   : > { %v649_v44 = vsel %vm648_vm9, %v645_v40, %v647_v43  ;;  %v650_v45 = vsel %vm648_vm9, %v647_v43, %v645_v40  ;;  %v733_v20 = vrot.slane %v894_v1, %v1090_v27  ;;  %v737_v21 = vrot.slane %v894_v1, %v1093_v28 }
 0x2cd   : > { %v666_v47 = vmul.f32 %v659_v35, %v650_v45  ;;  %v667_v48 = vmul.f32 %v663_v38, %v649_v44  ;;  %v761_v35 = vrot.slane %v895_v23, %v1093_v28  ;;  %v782_v43 = vrot.slane %v896_v37, %v1090_v27 }
 0x2ce   : > { %v621_v51 = vpop.permute.xlu0 %620  ;;  %v786_v44 = vrot.slane %v896_v37, %v1093_v28 }
 0x2cf   : > { %v623_v52 = vpop.permute.xlu1 %622 }
 0x2d0   : > { %v625_v53 = vsel %vm624_vm10, %v621_v51, %v623_v52  ;;  %v626_v54 = vsel %vm624_vm10, %v623_v52, %v621_v51 }
 0x2d1   : > { %v640_v56 = vmul.f32 %v633_v46, %v626_v54  ;;  %v641_v57 = vmul.f32 %v637_v49, %v625_v53 }
 0x2d2   : > { %v671_v60 = vpop.permute.xlu0 %670 }
 0x2d3   : > { %v642_v61 = vadd.f32 %v640_v56, %v618_v41  ;;  %v643_v62 = vadd.f32 %v641_v57, %v619_v42  ;;  %v673_v63 = vpop.permute.xlu1 %672 }
 0x2d4   : > { %v675_v0 = vsel %vm674_vm11, %v671_v60, %v673_v63  ;;  %v676_v2 = vsel %vm674_vm11, %v673_v63, %v671_v60 }
 0x2d5   : > { %v668_v5 = vadd.f32 %v666_v47, %v642_v61  ;;  %v669_v7 = vadd.f32 %v667_v48, %v643_v62  ;;  %v690_v8 = vmul.f32 %v683_v55, %v676_v2  ;;  %v691_v9 = vmul.f32 %v687_v58, %v675_v0 }
 0x2d6   : > { %v695_v10 = vpop.permute.xlu0 %694 }
 0x2d7   : > { %v692_v11 = vadd.f32 %v690_v8, %v668_v5  ;;  %v693_v13 = vadd.f32 %v691_v9, %v669_v7  ;;  %v697_v15 = vpop.permute.xlu1 %696 }
 0x2d8   : > { %v699_v16 = vsel %vm698_vm13, %v695_v10, %v697_v15  ;;  %v700_v17 = vsel %vm698_vm13, %v697_v15, %v695_v10 }
 0x2d9   : > { %v714_v18 = vmul.f32 %v707_v3, %v699_v16  ;;  %v715_v19 = vmul.f32 %v711_v4, %v700_v17 }
 0x2da   : > { %v719_v22 = vpop.permute.xlu0 %718 }
 0x2db   : > { %v716_v29 = vadd.f32 %v714_v18, %v692_v11  ;;  %v717_v30 = vadd.f32 %v715_v19, %v693_v13  ;;  %v721_v12 = vpop.permute.xlu1 %720 }
 0x2dc   : > { %v723_v31 = vsel %vm722_vm15, %v719_v22, %v721_v12  ;;  %v724_v32 = vsel %vm722_vm15, %v721_v12, %v719_v22 }
 0x2dd   : > { %v740_v33 = vmul.f32 %v733_v20, %v723_v31  ;;  %v741_v34 = vmul.f32 %v737_v21, %v724_v32 }
 0x2de   : > { %v745_v36 = vpop.permute.xlu0 %744 }
 0x2df   : > { %v742_v38 = vadd.f32 %v740_v33, %v716_v29  ;;  %v743_v39 = vadd.f32 %v741_v34, %v717_v30  ;;  %v747_v40 = vpop.permute.xlu1 %746 }
 0x2e0   : > { %v749_v25 = vsel %vm748_vm1, %v745_v36, %v747_v40  ;;  %v750_v41 = vsel %vm748_vm1, %v747_v40, %v745_v36 }
 0x2e1   : > { %v764_v24 = vmul.f32 %v757_v14, %v749_v25  ;;  %v765_v42 = vmul.f32 %v761_v35, %v750_v41 }
 0x2e2   : > { %v769_v45 = vpop.permute.xlu0 %768 }
 0x2e3   : > { %v766_v46 = vadd.f32 %v764_v24, %v742_v38  ;;  %v767_v47 = vadd.f32 %v765_v42, %v743_v39  ;;  %v771_v48 = vpop.permute.xlu1 %770 }
 0x2e4   : > { %v773_v6 = vsel %vm772_vm2, %v769_v45, %v771_v48  ;;  %v774_v49 = vsel %vm772_vm2, %v771_v48, %v769_v45 }
 0x2e5   : > { %v789_v50 = vmul.f32 %v782_v43, %v773_v6  ;;  %v790_v51 = vmul.f32 %v786_v44, %v774_v49 }
 0x2e7   : > { %v791_v52 = vadd.f32 %v789_v50, %v766_v46  ;;  %v792_v53 = vadd.f32 %v790_v51, %v767_v47 }
 0x2e9   : > { %v800_v54 = vrot.slane %v791_v52, 4  ;;  %v801_v26 = vrot.slane %v792_v53, 4 }
 0x2eb   : > { %804 = vst [vmem:[%s1014_s14 + $0x10] ss:$-12 sps:$4 sm:$0xff] %v800_v54   ;;  %805 = vst [vmem:[%s1014_s14 + $0x18] ss:$-12 sps:$4 sm:$0xff] %v801_v26  }
 0x2ec PF: > { %s17_s24 = sadd.s32 1, %s938_s24  }
 0x2ed   : > { %p14_p4 = scmp.ge.s32.totalorder %s17_s24, 4  }
 0x2ef   :  { %16 = sbr.rel (!%p14_p4) target bundleno = 1 (0x1), region = 79 }

</bundles_post_ra>
